<compile_context>
chip_gen: v7x
topology: tpu7x:2x2x1
jax: 0.10.0
libtpu: 0.0.40
codegen_flags: <defaults>
</compile_context>

<pallas_src>
import numpy as np
import jax
import jax.numpy as jnp
from jax.experimental import pallas as pl
from jax.experimental.pallas import tpu as pltpu


def _round_up(n, m):
    return ((n + m - 1) // m) * m


def _pick_block_b(B, target=512):
    """Largest divisor of B that is a multiple of 8 and <= target (else B)."""
    if B <= target:
        return B
    for cand in range(target, 7, -1):
        if B % cand == 0 and cand % 8 == 0:
            return cand
    return B


# ---------------------------------------------------------------------------
# Pallas kernel: fused receiver projections + stacked scoring + hinge loss
# ---------------------------------------------------------------------------
def _make_game_kernel(margin):
    margin = float(margin)  # compile-time constant baked into the kernel

    def kernel(stream_ref, msg_ref, w1_ref, b1_ref, w2_ref, b2_ref,
               aux_ref, out_ref):
        f32 = jnp.float32
        bf16 = jnp.bfloat16

        # fused receiver: hidden = tanh(msg @ W1 + b1)   (bf16 MXU, f32 acc,
        # tanh on the otherwise-idle EUP slot).  Padded msg lanes / W1 rows
        # and padded hidden lanes are zero => exact.
        h = jnp.tanh(
            jnp.dot(msg_ref[...], w1_ref[...], preferred_element_type=f32)
            + b1_ref[...])                                          # (bB, Hp)
        # predicted_f = hidden @ W_out + b_out  (output kept at true D=64)
        pred = (jnp.dot(h.astype(bf16), w2_ref[...],
                        preferred_element_type=f32)
                + b2_ref[...])                                      # (bB, D)

        # one multiply + one lane reduce gives all K+1 scores.
        # stream row 0 = image (target), rows 1..K = distractors.  bf16 on
        # the wire, f32 on the VPU (v5e-safe).
        stream = stream_ref[...].astype(f32)                        # (K+1, bB, D)
        scores = jnp.sum(stream * pred[None, :, :],
                         axis=-1, keepdims=True)                    # (K+1, bB, 1)
        target = scores[0:1]                                        # (1, bB, 1)
        ds_all = scores[1:]                                         # (K, bB, 1)

        # hinge reward and accuracy, vectorised over the K distractors
        hinge = jnp.maximum(0.0, margin - target + ds_all)          # (K, bB, 1)
        reward = jnp.sum(hinge, axis=0)                             # (bB, 1)
        # argmax(exp(scores)) == 0  <=>  target >= every distractor score
        acc = jnp.min((target >= ds_all).astype(f32), axis=0)       # (bB, 1)

        aux = aux_ref[...]                                          # (bB, 2)
        log_prob = aux[:, 0:1]
        entropy = aux[:, 1:2]
        loss = reward * (-log_prob)

        loss_sum = jnp.sum(loss)
        acc_sum = jnp.sum(acc)
        ent_sum = jnp.sum(entropy)

        # pack the three block-partial sums into ONE lane-dense (1,1,128)
        # tile (single unmasked store instead of three masked (1,1) outputs)
        lane = jax.lax.broadcasted_iota(jnp.int32, (1, 1, 128), 2)
        out_ref[...] = (jnp.where(lane == 0, loss_sum, 0.0)
                        + jnp.where(lane == 1, acc_sum, 0.0)
                        + jnp.where(lane == 2, ent_sum, 0.0))

    return kernel


def game_pallas(image_f, distractors, message, r_w1, r_b1, w_out, b_out,
                log_prob, entropy, margin, *, block_b=None):
    """Game hot path in one pallas_call. Returns (loss_mean, acc_mean, ent_mean)."""
    f32, bf16 = jnp.float32, jnp.bfloat16
    B, D = image_f.shape
    K = distractors.shape[0]
    M = message.shape[1]
    H = r_w1.shape[1]

    # small receiver operands: lane-dense zero padding (zeros => exact math)
    Mp, Hp = _round_up(M, 128), _round_up(H, 128)

    # dominant stream: (K+1, B, D) bf16, UNPADDED last dim, row 0 = image
    stream = jnp.concatenate(
        [image_f[None].astype(bf16), distractors.astype(bf16)], axis=0)

    msg_p = jnp.zeros((B, Mp), bf16).at[:, :M].set(message.astype(bf16))
    w1_p = jnp.zeros((Mp, Hp), bf16).at[:M, :H].set(r_w1.astype(bf16))
    b1_p = jnp.zeros((1, Hp), f32).at[:, :H].set(r_b1.reshape(1, H).astype(f32))
    w2_p = jnp.zeros((Hp, D), bf16).at[:H, :].set(w_out.astype(bf16))
    b2_p = b_out.reshape(1, D).astype(f32)
    aux = jnp.stack([log_prob.reshape(B).astype(f32),
                     entropy.reshape(B).astype(f32)], axis=1)       # (B, 2)

    if block_b is None:
        block_b = _pick_block_b(B)      # nblk >= 2 at real batch sizes
    assert B % block_b == 0 and (block_b % 8 == 0 or block_b == B)
    nblk = B // block_b

    kernel = _make_game_kernel(margin)
    out = pl.pallas_call(
        kernel,
        out_shape=jax.ShapeDtypeStruct((nblk, 1, 128), f32),
        grid_spec=pltpu.PrefetchScalarGridSpec(
            num_scalar_prefetch=0,
            grid=(nblk,),
            in_specs=[
                pl.BlockSpec((K + 1, block_b, D), lambda i: (0, i, 0)),
                pl.BlockSpec((block_b, Mp), lambda i: (i, 0)),
                pl.BlockSpec((Mp, Hp), lambda i: (0, 0)),
                pl.BlockSpec((1, Hp), lambda i: (0, 0)),
                pl.BlockSpec((Hp, D), lambda i: (0, 0)),
                pl.BlockSpec((1, D), lambda i: (0, 0)),
                pl.BlockSpec((block_b, 2), lambda i: (i, 0)),
            ],
            out_specs=pl.BlockSpec((1, 1, 128), lambda i: (i, 0, 0)),
        ),
        # batch blocks are independent -> megacore / v7x dual-TC can split them
        compiler_params=pltpu.CompilerParams(
            dimension_semantics=("parallel",)),
    )(stream, msg_p, w1_p, b1_p, w2_p, b2_p, aux)

    # tiny epilogue: per-block partial sums -> means
    totals = jnp.sum(out[:, 0, :], axis=0)
    inv_b = 1.0 / B
    return totals[0] * inv_b, totals[1] * inv_b, totals[2] * inv_b


# ---------------------------------------------------------------------------
# Plain-JAX glue: deterministic surrogate Sender (LSTM/Gumbel source missing)
# ---------------------------------------------------------------------------
def sender_forward(params, image_f, greedy=True):
    """Returns (entropy (B,), x one-hot message (B, T, V), log_prob (B,))."""
    h = jnp.tanh(image_f @ params["s_w1"] + params["s_b1"])                 # (B, Hs)
    logits = jnp.einsum("bh,thv->btv", h, params["s_w2"]) + params["s_b2"]  # (B, T, V)
    logp_all = jax.nn.log_softmax(logits, axis=-1)
    probs = jnp.exp(logp_all)
    tokens = jnp.argmax(logits, axis=-1)                                    # greedy
    x = jax.nn.one_hot(tokens, logits.shape[-1], dtype=jnp.float32)         # (B, T, V)
    log_prob = jnp.sum(
        jnp.take_along_axis(logp_all, tokens[..., None], axis=-1)[..., 0], axis=-1)
    entropy = jnp.sum(-jnp.sum(probs * logp_all, axis=-1), axis=-1)
    return entropy, x, log_prob


# ---------------------------------------------------------------------------
# Pure-JAX reference of the Game math (mirrors the kernel's bf16 casts)
# ---------------------------------------------------------------------------
def game_ref(image_f, distractors, message, r_w1, r_b1, w_out, b_out,
             log_prob, entropy, margin):
    f32, bf16 = jnp.float32, jnp.bfloat16
    h = jnp.tanh(jnp.dot(message.astype(bf16), r_w1.astype(bf16),
                         preferred_element_type=f32) + r_b1.astype(f32))
    pred = (jnp.dot(h.astype(bf16), w_out.astype(bf16),
                    preferred_element_type=f32)
            + b_out.reshape(1, -1).astype(f32))
    img = image_f.astype(bf16).astype(f32)
    target = jnp.sum(img * pred, axis=-1)
    reward = jnp.zeros_like(target)
    scores = [target]
    for k in range(distractors.shape[0]):
        d = distractors[k].astype(bf16).astype(f32)
        ds = jnp.sum(d * pred, axis=-1)
        reward = reward + jnp.maximum(0.0, margin - target + ds)
        scores.append(ds)
    all_scores = jnp.exp(jnp.stack(scores, axis=1))
    acc = (jnp.argmax(all_scores, axis=1) == 0).astype(f32)
    loss = reward * -log_prob
    return jnp.mean(loss), jnp.mean(acc), jnp.mean(entropy)


if __name__ == "__main__":
    # Small, module-consistent shapes
    B, D = 8, 64            # batch, image_dim
    V, T = 16, 6            # vocab_size, max_steps
    S_HID, R_HID = 32, 32   # s_hid_dim, r_hid_dim
    K = 3                   # number of distractors
    MARGIN = 0.5

    key = jax.random.PRNGKey(0)
    keys = jax.random.split(key, 8)

    image_f = jax.random.normal(keys[0], (B, D), dtype=jnp.float32) / np.sqrt(D)
    distractors = jax.random.normal(keys[1], (K, B, D), dtype=jnp.float32) / np.sqrt(D)

    params = {
        "s_w1": jax.random.normal(keys[2], (D, S_HID), dtype=jnp.float32) * 0.1,
        "s_b1": jnp.zeros((S_HID,), dtype=jnp.float32),
        "s_w2": jax.random.normal(keys[3], (T, S_HID, V), dtype=jnp.float32) * 0.1,
        "s_b2": jnp.zeros((T, V), dtype=jnp.float32),
        "r_w1": jax.random.normal(keys[4], (T * V, R_HID), dtype=jnp.float32) * 0.1,
        "r_b1": jnp.zeros((R_HID,), dtype=jnp.float32),
        "r_w_out": jax.random.normal(keys[5], (R_HID, D), dtype=jnp.float32) * 0.1,
        "r_b_out": jnp.zeros((1, D), dtype=jnp.float32),
    }

    @jax.jit
    def forward(params, image_f, distractors):
        entropy, x, log_prob = sender_forward(params, image_f, greedy=True)
        message = x.reshape(x.shape[0], -1)          # (B, T*V) flat one-hot message
        return game_pallas(image_f, distractors, message,
                           params["r_w1"], params["r_b1"],
                           params["r_w_out"], params["r_b_out"],
                           log_prob, entropy, MARGIN)

    loss, acc, ent = forward(params, image_f, distractors)
    jax.block_until_ready((loss, acc, ent))

    # Sanity check vs pure-JAX reference of the Game math (mirrors bf16 casts;
    # vs a pure-f32 PyTorch Game expect ~1e-2-level relative differences)
    entropy, x, log_prob = sender_forward(params, image_f, greedy=True)
    message = x.reshape(B, -1)
    loss_r, acc_r, ent_r = game_ref(image_f, distractors, message,
                                    params["r_w1"], params["r_b1"],
                                    params["r_w_out"], params["r_b_out"],
                                    log_prob, entropy, MARGIN)
    np.testing.assert_allclose(np.array(loss), np.array(loss_r), rtol=1e-3, atol=1e-3)
    np.testing.assert_allclose(np.array(acc), np.array(acc_r), rtol=1e-3, atol=1e-3)
    np.testing.assert_allclose(np.array(ent), np.array(ent_r), rtol=1e-3, atol=1e-3)

    print("KERNEL_OK")
</pallas_src>

<mosaic_0001>
module attributes {stable_mosaic.version = 11 : i64} {
  func.func @kernel(%arg0: i32, %arg1: memref<4x8x64xbf16, #tpu.memory_space<vmem>>, %arg2: memref<8x128xbf16, #tpu.memory_space<vmem>>, %arg3: memref<128x128xbf16, #tpu.memory_space<vmem>>, %arg4: memref<1x128xf32, #tpu.memory_space<vmem>>, %arg5: memref<128x64xbf16, #tpu.memory_space<vmem>>, %arg6: memref<1x64xf32, #tpu.memory_space<vmem>>, %arg7: memref<8x2xf32, #tpu.memory_space<vmem>>, %arg8: memref<1x1x128xf32, #tpu.memory_space<vmem>>) attributes {dimension_semantics = [#tpu.dimension_semantics<parallel>], iteration_bounds = array<i64: 1>, scalar_prefetch = 0 : i64, scratch_operands = 0 : i64, tpu.core_type = #tpu.core_type<tc>, window_params = [{transform_indices = @transform_0, window_bounds = array<i64: 4, 8, 64>}, {transform_indices = @transform_1, window_bounds = array<i64: 8, 128>}, {pipeline_mode = #tpu.pipeline_mode<synchronous>, transform_indices = @transform_2, window_bounds = array<i64: 128, 128>}, {pipeline_mode = #tpu.pipeline_mode<synchronous>, transform_indices = @transform_3, window_bounds = array<i64: 1, 128>}, {pipeline_mode = #tpu.pipeline_mode<synchronous>, transform_indices = @transform_4, window_bounds = array<i64: 128, 64>}, {pipeline_mode = #tpu.pipeline_mode<synchronous>, transform_indices = @transform_5, window_bounds = array<i64: 1, 64>}, {transform_indices = @transform_6, window_bounds = array<i64: 8, 2>}, {transform_indices = @transform_7, window_bounds = array<i64: 1, 1, 128>}]} {
    %c0 = arith.constant 0 : index
    %c0_0 = arith.constant 0 : index
    %0 = vector.load %arg2[%c0, %c0_0] : memref<8x128xbf16, #tpu.memory_space<vmem>>, vector<8x128xbf16>
    %c0_1 = arith.constant 0 : index
    %c0_2 = arith.constant 0 : index
    %1 = vector.load %arg3[%c0_1, %c0_2] : memref<128x128xbf16, #tpu.memory_space<vmem>>, vector<128x128xbf16>
    %cst = arith.constant dense<0.000000e+00> : vector<8x128xf32>
    %2 = tpu.matmul %0, %1, %cst {dimension_numbers = #tpu.dot_dimension_numbers<[1], [0], [0], [1], [0, 0, 1, 1], [], []>} : vector<8x128xbf16>, vector<128x128xbf16>, vector<8x128xf32> -> vector<8x128xf32>
    %c0_3 = arith.constant 0 : index
    %c0_4 = arith.constant 0 : index
    %3 = vector.load %arg4[%c0_3, %c0_4] : memref<1x128xf32, #tpu.memory_space<vmem>>, vector<1x128xf32>
    %4 = vector.broadcast %3 : vector<1x128xf32> to vector<8x128xf32>
    %5 = arith.addf %2, %4 : vector<8x128xf32>
    %6 = math.tanh %5 : vector<8x128xf32>
    %7 = arith.truncf %6 : vector<8x128xf32> to vector<8x128xbf16>
    %c0_5 = arith.constant 0 : index
    %c0_6 = arith.constant 0 : index
    %8 = vector.load %arg5[%c0_5, %c0_6] : memref<128x64xbf16, #tpu.memory_space<vmem>>, vector<128x64xbf16>
    %cst_7 = arith.constant dense<0.000000e+00> : vector<8x64xf32>
    %9 = tpu.matmul %7, %8, %cst_7 {dimension_numbers = #tpu.dot_dimension_numbers<[1], [0], [0], [1], [0, 0, 1, 1], [], []>} : vector<8x128xbf16>, vector<128x64xbf16>, vector<8x64xf32> -> vector<8x64xf32>
    %c0_8 = arith.constant 0 : index
    %c0_9 = arith.constant 0 : index
    %10 = vector.load %arg6[%c0_8, %c0_9] : memref<1x64xf32, #tpu.memory_space<vmem>>, vector<1x64xf32>
    %11 = vector.broadcast %10 : vector<1x64xf32> to vector<8x64xf32>
    %12 = arith.addf %9, %11 : vector<8x64xf32>
    %c0_10 = arith.constant 0 : index
    %c0_11 = arith.constant 0 : index
    %c0_12 = arith.constant 0 : index
    %13 = vector.load %arg1[%c0_10, %c0_11, %c0_12] : memref<4x8x64xbf16, #tpu.memory_space<vmem>>, vector<4x8x64xbf16>
    %14 = arith.extf %13 : vector<4x8x64xbf16> to vector<4x8x64xf32>
    %15 = vector.shape_cast %12 : vector<8x64xf32> to vector<1x8x64xf32>
    %16 = vector.broadcast %15 : vector<1x8x64xf32> to vector<4x8x64xf32>
    %17 = arith.mulf %14, %16 : vector<4x8x64xf32>
    %cst_13 = arith.constant dense<0.000000e+00> : vector<4x8xf32>
    %18 = vector.multi_reduction <add>, %17, %cst_13 [2] : vector<4x8x64xf32> to vector<4x8xf32>
    %19 = vector.shape_cast %18 : vector<4x8xf32> to vector<4x8x1xf32>
    %20 = vector.extract_strided_slice %19 {offsets = [0, 0, 0], sizes = [1, 8, 1], strides = [1, 1, 1]} : vector<4x8x1xf32> to vector<1x8x1xf32>
    %21 = vector.extract_strided_slice %19 {offsets = [1, 0, 0], sizes = [3, 8, 1], strides = [1, 1, 1]} : vector<4x8x1xf32> to vector<3x8x1xf32>
    %cst_14 = arith.constant 5.000000e-01 : f32
    %22 = vector.broadcast %cst_14 : f32 to vector<1x8x1xf32>
    %23 = arith.subf %22, %20 : vector<1x8x1xf32>
    %24 = vector.broadcast %23 : vector<1x8x1xf32> to vector<3x8x1xf32>
    %25 = arith.addf %24, %21 : vector<3x8x1xf32>
    %cst_15 = arith.constant 0.000000e+00 : f32
    %26 = vector.broadcast %cst_15 : f32 to vector<3x8x1xf32>
    %27 = arith.maximumf %26, %25 : vector<3x8x1xf32>
    %cst_16 = arith.constant dense<0.000000e+00> : vector<8x1xf32>
    %28 = vector.multi_reduction <add>, %27, %cst_16 [0] : vector<3x8x1xf32> to vector<8x1xf32>
    %29 = vector.broadcast %20 : vector<1x8x1xf32> to vector<3x8x1xf32>
    %30 = arith.cmpf oge, %29, %21 : vector<3x8x1xf32>
    %31 = arith.extui %30 : vector<3x8x1xi1> to vector<3x8x1xi32>
    %32 = arith.sitofp %31 : vector<3x8x1xi32> to vector<3x8x1xf32>
    %cst_17 = arith.constant dense<0x7F800000> : vector<8x1xf32>
    %33 = vector.multi_reduction <minimumf>, %32, %cst_17 [0] : vector<3x8x1xf32> to vector<8x1xf32>
    %c0_18 = arith.constant 0 : index
    %c0_19 = arith.constant 0 : index
    %34 = vector.load %arg7[%c0_18, %c0_19] : memref<8x2xf32, #tpu.memory_space<vmem>>, vector<8x2xf32>
    %35 = vector.extract_strided_slice %34 {offsets = [0, 0], sizes = [8, 1], strides = [1, 1]} : vector<8x2xf32> to vector<8x1xf32>
    %36 = vector.extract_strided_slice %34 {offsets = [0, 1], sizes = [8, 1], strides = [1, 1]} : vector<8x2xf32> to vector<8x1xf32>
    %cst_20 = arith.constant 0.000000e+00 : f32
    %37 = vector.broadcast %cst_20 : f32 to vector<8x1xf32>
    %38 = arith.subf %37, %35 : vector<8x1xf32>
    %39 = arith.mulf %28, %38 : vector<8x1xf32>
    %40 = vector.shape_cast %39 : vector<8x1xf32> to vector<1x8x1xf32>
    %cst_21 = arith.constant dense<0.000000e+00> : vector<1xf32>
    %41 = vector.multi_reduction <add>, %40, %cst_21 [1, 2] : vector<1x8x1xf32> to vector<1xf32>
    %42 = vector.shape_cast %41 : vector<1xf32> to vector<1x1x1xf32>
    %43 = vector.extract %42[0, 0, 0] : f32 from vector<1x1x1xf32>
    %44 = vector.shape_cast %33 : vector<8x1xf32> to vector<1x8x1xf32>
    %cst_22 = arith.constant dense<0.000000e+00> : vector<1xf32>
    %45 = vector.multi_reduction <add>, %44, %cst_22 [1, 2] : vector<1x8x1xf32> to vector<1xf32>
    %46 = vector.shape_cast %45 : vector<1xf32> to vector<1x1x1xf32>
    %47 = vector.extract %46[0, 0, 0] : f32 from vector<1x1x1xf32>
    %48 = vector.shape_cast %36 : vector<8x1xf32> to vector<1x8x1xf32>
    %cst_23 = arith.constant dense<0.000000e+00> : vector<1xf32>
    %49 = vector.multi_reduction <add>, %48, %cst_23 [1, 2] : vector<1x8x1xf32> to vector<1xf32>
    %50 = vector.shape_cast %49 : vector<1xf32> to vector<1x1x1xf32>
    %51 = vector.extract %50[0, 0, 0] : f32 from vector<1x1x1xf32>
    %52 = tpu.iota {dimensions = array<i32: 2>} : vector<1x1x128xi32>
    %c0_i32 = arith.constant 0 : i32
    %53 = vector.broadcast %c0_i32 : i32 to vector<1x1x128xi32>
    %54 = arith.cmpi eq, %52, %53 : vector<1x1x128xi32>
    %cst_24 = arith.constant 0.000000e+00 : f32
    %55 = vector.broadcast %43 : f32 to vector<1x1x128xf32>
    %56 = vector.broadcast %cst_24 : f32 to vector<1x1x128xf32>
    %57 = arith.select %54, %55, %56 : vector<1x1x128xi1>, vector<1x1x128xf32>
    %c1_i32 = arith.constant 1 : i32
    %58 = vector.broadcast %c1_i32 : i32 to vector<1x1x128xi32>
    %59 = arith.cmpi eq, %52, %58 : vector<1x1x128xi32>
    %cst_25 = arith.constant 0.000000e+00 : f32
    %60 = vector.broadcast %47 : f32 to vector<1x1x128xf32>
    %61 = vector.broadcast %cst_25 : f32 to vector<1x1x128xf32>
    %62 = arith.select %59, %60, %61 : vector<1x1x128xi1>, vector<1x1x128xf32>
    %63 = arith.addf %57, %62 : vector<1x1x128xf32>
    %c2_i32 = arith.constant 2 : i32
    %64 = vector.broadcast %c2_i32 : i32 to vector<1x1x128xi32>
    %65 = arith.cmpi eq, %52, %64 : vector<1x1x128xi32>
    %cst_26 = arith.constant 0.000000e+00 : f32
    %66 = vector.broadcast %51 : f32 to vector<1x1x128xf32>
    %67 = vector.broadcast %cst_26 : f32 to vector<1x1x128xf32>
    %68 = arith.select %65, %66, %67 : vector<1x1x128xi1>, vector<1x1x128xf32>
    %69 = arith.addf %63, %68 : vector<1x1x128xf32>
    %c0_27 = arith.constant 0 : index
    %c0_28 = arith.constant 0 : index
    %c0_29 = arith.constant 0 : index
    %70 = vector.load %arg8[%c0_27, %c0_28, %c0_29] : memref<1x1x128xf32, #tpu.memory_space<vmem>>, vector<1x1x128xf32>
    tpu.vector_store %arg8[%c0_27, %c0_28, %c0_29], %69 {strides = array<i32>} : memref<1x1x128xf32, #tpu.memory_space<vmem>>, vector<1x1x128xf32>,
    return
  }
  func.func @transform_0(%arg0: i32) -> (i32, i32, i32) {
    %c0_i32 = arith.constant 0 : i32
    %c0_i32_0 = arith.constant 0 : i32
    %c0_i32_1 = arith.constant 0 : i32
    return %c0_i32, %arg0, %c0_i32_0 : i32, i32, i32
  }
  func.func @transform_1(%arg0: i32) -> (i32, i32) {
    %c0_i32 = arith.constant 0 : i32
    %c0_i32_0 = arith.constant 0 : i32
    return %arg0, %c0_i32 : i32, i32
  }
  func.func @transform_2(%arg0: i32) -> (i32, i32) {
    %c0_i32 = arith.constant 0 : i32
    %c0_i32_0 = arith.constant 0 : i32
    %c0_i32_1 = arith.constant 0 : i32
    return %c0_i32, %c0_i32_0 : i32, i32
  }
  func.func @transform_3(%arg0: i32) -> (i32, i32) {
    %c0_i32 = arith.constant 0 : i32
    %c0_i32_0 = arith.constant 0 : i32
    %c0_i32_1 = arith.constant 0 : i32
    return %c0_i32, %c0_i32_0 : i32, i32
  }
  func.func @transform_4(%arg0: i32) -> (i32, i32) {
    %c0_i32 = arith.constant 0 : i32
    %c0_i32_0 = arith.constant 0 : i32
    %c0_i32_1 = arith.constant 0 : i32
    return %c0_i32, %c0_i32_0 : i32, i32
  }
  func.func @transform_5(%arg0: i32) -> (i32, i32) {
    %c0_i32 = arith.constant 0 : i32
    %c0_i32_0 = arith.constant 0 : i32
    %c0_i32_1 = arith.constant 0 : i32
    return %c0_i32, %c0_i32_0 : i32, i32
  }
  func.func @transform_6(%arg0: i32) -> (i32, i32) {
    %c0_i32 = arith.constant 0 : i32
    %c0_i32_0 = arith.constant 0 : i32
    return %arg0, %c0_i32 : i32, i32
  }
  func.func @transform_7(%arg0: i32) -> (i32, i32, i32) {
    %c0_i32 = arith.constant 0 : i32
    %c0_i32_0 = arith.constant 0 : i32
    %c0_i32_1 = arith.constant 0 : i32
    return %arg0, %c0_i32, %c0_i32_0 : i32, i32, i32
  }
}

</mosaic_0001>

<bundles_post_ra>
// kernel: forward.1
= control target key start
LH: loop header
LB: loop body
LE: loop exit
PB: predicated region body
PF: predicated region fallthrough
CT: control target
= control target key end

     0   :  { %v468_v0 = vmov 0.0   ;;  %vm469_vm0 = vmmov 0   ;;  %vm264_vm1 = vcmask 523264   ;;  %vm300_vm5 = vcmask 7168   ;;  %s601_s2 = inlined_call_operand.vmem [shape: bf16[128,128], index: 2, kind: input, shape index: {}]   ;;  %s602_s4 = inlined_call_operand.vmem [shape: bf16[128,64], index: 4, kind: input, shape index: {}]   ;;  %s603_s1 = inlined_call_operand.vmem [shape: bf16[8,128], index: 1, kind: input, shape index: {}]   ;;  %s604_s3 = inlined_call_operand.vmem [shape: f32[1,128], index: 3, kind: input, shape index: {}]   ;;  %s605_s0 = inlined_call_operand.vmem [shape: bf16[4,8,64], index: 0, kind: input, shape index: {}]   ;;  %s606_s5 = inlined_call_operand.vmem [shape: f32[1,64], index: 5, kind: input, shape index: {}]   ;;  %s607_s6 = inlined_call_operand.vmem [shape: f32[8,2], index: 6, kind: input, shape index: {}]   ;;  %s608_s7 = inlined_call_operand.vmem [shape: f32[1,1,128], index: 7, kind: output, shape index: {}]  }
   0x1   :  { %401 = vmatprep.subr.bf16.mxu0 %v468_v0  ;;  %v450_v1 = vld [vmem:[%s601_s2] sm:$0xff]   ;;  %417 = vmatprep.mubr.msk.bf16.mxu0 %vm469_vm0, %v468_v0  ;;  %v451_v2 = vld [vmem:[%s601_s2 + $0x8] sm:$0xff]   ;;  %v452_v3 = vld [vmem:[%s601_s2 + $0x10] sm:$0xff]  }
   0x2   :  { %421 = vmatprep.subr.bf16.mxu1 %v468_v0  ;;  %437 = vmatprep.mubr.msk.bf16.mxu1 %vm469_vm0, %v468_v0  ;;  %v458_v4 = vld [vmem:[%s602_s4] sm:$0xff]   ;;  %v453_v5 = vld [vmem:[%s601_s2 + $0x18] sm:$0xff]   ;;  %v459_v6 = vld [vmem:[%s602_s4 + $0x8] sm:$0xff]  }
   0x3   :  { %402 = vmatpush3.bf16.msra.mxu0 %v450_v1  ;;  %422 = vmatpush3.bf16.msra.mxu1 %v458_v4  ;;  %v454_v7 = vld [vmem:[%s601_s2 + $0x20] sm:$0xff]   ;;  %v460_v8 = vld [vmem:[%s602_s4 + $0x10] sm:$0xff]   ;;  %v455_v9 = vld [vmem:[%s601_s2 + $0x28] sm:$0xff]  }
   0x4   :  { %403 = vmatprep.subr.bf16.mxu0 %v468_v0  ;;  %423 = vmatprep.subr.bf16.mxu1 %v468_v0  ;;  %v461_v10 = vld [vmem:[%s602_s4 + $0x18] sm:$0xff]   ;;  %v456_v11 = vld [vmem:[%s601_s2 + $0x30] sm:$0xff]   ;;  %v27_v13 = vld [vmem:[%s603_s1] sm:$0xf] }
   0x5   :  { %v457_v12 = vld [vmem:[%s601_s2 + $0x38] sm:$0xff]   ;;  %v462_v14 = vld [vmem:[%s602_s4 + $0x20] sm:$0xff]   ;;  %v463_v15 = vld [vmem:[%s602_s4 + $0x28] sm:$0xff]  }
   0x6   :  { %v464_v16 = vld [vmem:[%s602_s4 + $0x30] sm:$0xff]   ;;  %v465_v17 = vld [vmem:[%s602_s4 + $0x38] sm:$0xff]   ;;  %v353_v18 = vld [vmem:[%s604_s3] ss:$0 sm:$0xff] }
   0x7   :  { %404 = vmatpush3.bf16.msra.mxu0 %v451_v2  ;;  %424 = vmatpush3.bf16.msra.mxu1 %v459_v6  ;;  %v382_v26 = vld [vmem:[%s605_s0 + $0x8] sm:$0xff]   ;;  %v375_v27 = vld [vmem:[%s605_s0] sm:$0xff]  }
   0x8   :  { %405 = vmatprep.subr.bf16.mxu0 %v468_v0  ;;  %425 = vmatprep.subr.bf16.mxu1 %v468_v0  ;;  %v362_v28 = vld [vmem:[%s606_s5] ss:$0 sm:$0xff]  ;;  %v380_v29 = vunpack.c.l.bf16 %v382_v26  ;;  %v376_v30 = vunpack.c.l.bf16 %v375_v27  ;;  %v381_v34 = vunpack.c.h.bf16 %v382_v26  ;;  %v377_v35 = vunpack.c.h.bf16 %v375_v27  ;;  %s470_s5 = smov 127  }
   0x9   :  { %v297_v46 = vld [vmem:[%s607_s6] sm:$0xff] }
   0xa   :  { %v298_v59 = vsub.f32 0.0, %v297_v46 }
   0xb   :  { %406 = vmatpush3.bf16.msra.mxu0 %v452_v3  ;;  %426 = vmatpush3.bf16.msra.mxu1 %v460_v8 }
   0xc   :  { %407 = vmatprep.subr.bf16.mxu0 %v468_v0  ;;  %427 = vmatprep.subr.bf16.mxu1 %v468_v0 }
   0xf   :  { %408 = vmatpush3.bf16.msra.mxu0 %v453_v5  ;;  %428 = vmatpush3.bf16.msra.mxu1 %v461_v10 }
  0x10   :  { %409 = vmatprep.subr.bf16.mxu0 %v468_v0  ;;  %429 = vmatprep.subr.bf16.mxu1 %v468_v0 }
  0x13   :  { %410 = vmatpush3.bf16.msra.mxu0 %v454_v7  ;;  %430 = vmatpush3.bf16.msra.mxu1 %v462_v14 }
  0x14   :  { %411 = vmatprep.subr.bf16.mxu0 %v468_v0  ;;  %431 = vmatprep.subr.bf16.mxu1 %v468_v0 }
  0x17   :  { %412 = vmatpush3.bf16.msra.mxu0 %v455_v9  ;;  %432 = vmatpush3.bf16.msra.mxu1 %v463_v15 }
  0x18   :  { %413 = vmatprep.subr.bf16.mxu0 %v468_v0  ;;  %433 = vmatprep.subr.bf16.mxu1 %v468_v0 }
  0x1b   :  { %414 = vmatpush3.bf16.msra.mxu0 %v456_v11  ;;  %434 = vmatpush3.bf16.msra.mxu1 %v464_v16 }
  0x1c   :  { %415 = vmatprep.subr.bf16.mxu0 %v468_v0  ;;  %435 = vmatprep.subr.bf16.mxu1 %v468_v0 }
  0x1f   :  { %416 = vmatpush3.bf16.msra.mxu0 %v457_v12  ;;  %436 = vmatpush3.bf16.msra.mxu1 %v465_v17 }
  0x22   :  { %418 = vmatmul.mubr.bf16.vlgmr.msra.gmra.mrb[0].mxu0 %v27_v13 }
  0xf5   :  { %v133_v19 = vpop.f32.mrb[0].mxu0 }
  0xf6   :  { %v134_v20 = vadd.f32 %v353_v18, %v133_v19  ;;  %v419_v21 = vpop.f32.mrb[1].mxu0 }
  0xf7   :  { %v136_v22 = vpop.f32.mrb[2].mxu0 }
  0xf8   :  { %466 = vtanh.f32 %v134_v20  ;;  %v420_v23 = vpop.f32.mrb[3].mxu0 }
 0x102   :  { %v467_v24 = vpop.eup %466 }
 0x103   :  { %v140_v25 = vpack.c.bf16 %v467_v24, %v467_v24 }
 0x105   :  { %438 = vmatmul.mubr.bf16.vlgmr.msra.gmra.mrb[0].mxu1 %v140_v25 }
 0x1d8   :  { %v246_v31 = vpop.f32.mrb[0].mxu1 }
 0x1d9   :  { %v247_v32 = vadd.f32 %v362_v28, %v246_v31  ;;  %v439_v33 = vpop.f32.mrb[1].mxu1  ;;  %v335_v28 = vlaneseq }
 0x1da   :  { %v249_v36 = vpop.f32.mrb[2].mxu1 }
 0x1db   :  { %v440_v37 = vpop.f32.mrb[3].mxu1  ;;  %v262_v38 = vmul.f32 %v380_v29, %v247_v32  ;;  %v260_v39 = vmul.f32 %v376_v30, %v247_v32  ;;  %v263_v42 = vmul.f32 %v381_v34, %v247_v32  ;;  %v261_v43 = vmul.f32 %v377_v35, %v247_v32 }
 0x1dc   :  { %v336_v29 = vand.u32 127, %v335_v28 }
 0x1dd   :  { %v271_v40 = vsel %vm264_vm1, %v262_v38, 0.0  ;;  %v265_v41 = vsel %vm264_vm1, %v260_v39, 0.0  ;;  %v274_v44 = vsel %vm264_vm1, %v263_v42, 0.0  ;;  %v268_v45 = vsel %vm264_vm1, %v261_v43, 0.0 }
 0x1de   :  { %272 = vadd.xlane.f32.xlu1 %v271_v40  ;;  %266 = vadd.xlane.f32.xlu0 %v265_v41  ;;  %vm337_vm6 = vcmp.eq.s32.totalorder %v336_v29, 0  ;;  %vm340_vm7 = vcmp.eq.s32.totalorder %v336_v29, 1  ;;  %vm344_vm8 = vcmp.eq.s32.totalorder %v336_v29, 2 }
 0x1e2   :  { %275 = vadd.xlane.f32.xlu1 %v274_v44  ;;  %269 = vadd.xlane.f32.xlu0 %v268_v45 }
 0x1f8   :  { %322 = vrot.lane.b32.xlu0 %v297_v46, %s470_s5 }
 0x26b   :  { %v273_v47 = vpop.xlane.xlu1 %272  ;;  %v267_v48 = vpop.xlane.xlu0 %266 }
 0x26c   :  { %v277_v49 = vsub.f32 0.5, %v267_v48  ;;  %vm287_vm2 = vcmp.ge.f32.partialorder %v267_v48, %v273_v47 }
 0x26d   :  { %v372_v56 = vsel %vm287_vm2, 1.0, %v468_v0 }
 0x26e   :  { %v279_v50 = vadd.f32 %v277_v49, %v273_v47 }
 0x26f   :  { %v276_v51 = vpop.xlane.xlu1 %275  ;;  %v270_v52 = vpop.xlane.xlu0 %269 }
 0x270   :  { %v280_v53 = vadd.f32 %v277_v49, %v276_v51  ;;  %v278_v54 = vadd.f32 %v277_v49, %v270_v52  ;;  %vm288_vm3 = vcmp.ge.f32.partialorder %v267_v48, %v276_v51  ;;  %vm286_vm4 = vcmp.ge.f32.partialorder %v267_v48, %v270_v52 }
 0x271   :  { %v282_v55 = vmax.f32 %v279_v50, 0.0  ;;  %v371_v58 = vsel %vm286_vm4, 1.0, %v468_v0  ;;  %v373_v62 = vsel %vm288_vm3, 1.0, %v468_v0 }
 0x272   :  { %v281_v57 = vmax.f32 %v278_v54, 0.0  ;;  %v295_v60 = vmin.f32 %v371_v58, %v372_v56  ;;  %v283_v61 = vmax.f32 %v280_v53, 0.0 }
 0x273   :  { %v323_v6 = vpop.permute.xlu0 %322 }
 0x274   :  { %v284_v63 = vadd.f32 %v282_v55, %v281_v57  ;;  %v296_v1 = vmin.f32 %v295_v60, %v373_v62  ;;  %v325_v7 = vsel %vm300_vm5, %v323_v6, 0.0 }
 0x276   :  { %v285_v2 = vadd.f32 %v284_v63, %v283_v61  ;;  %v311_v3 = vsel %vm300_vm5, %v296_v1, 0.0 }
 0x277   :  { %312 = vadd.xlane.f32.xlu1 %v311_v3 }
 0x278   :  { %v299_v4 = vmul.f32 %v298_v59, %v285_v2 }
 0x27a   :  { %v301_v5 = vsel %vm300_vm5, %v299_v4, 0.0 }
 0x27b   :  { %302 = vadd.xlane.f32.xlu1 %v301_v5 }
 0x27f   :  { %326 = vadd.xlane.f32.xlu1 %v325_v7 }
 0x304   :  { %v313_v8 = vpop.xlane.xlu1 %312 }
 0x305   :  { %v314_v9 = vrot.slane %v313_v8, 4 }
 0x307   :  { %v315_v10 = vadd.f32 %v314_v9, %v313_v8 }
 0x308   :  { %v303_v11 = vpop.xlane.xlu1 %302 }
 0x309   :  { %v316_v12 = vrot.slane %v315_v10, 2  ;;  %v304_v13 = vrot.slane %v303_v11, 4 }
 0x30b   :  { %v305_v14 = vadd.f32 %v304_v13, %v303_v11  ;;  %v317_v15 = vadd.f32 %v316_v12, %v315_v10 }
 0x30c   :  { %v327_v0 = vpop.xlane.xlu1 %326 }
 0x30d   :  { %v306_v16 = vrot.slane %v305_v14, 2  ;;  %v328_v17 = vrot.slane %v327_v0, 4  ;;  %v318_v20 = vrot.slane %v317_v15, 1 }
 0x30f   :  { %v329_v18 = vadd.f32 %v328_v17, %v327_v0  ;;  %v307_v19 = vadd.f32 %v306_v16, %v305_v14  ;;  %v319_v25 = vadd.f32 %v318_v20, %v317_v15 }
 0x311   :  { %v330_v21 = vrot.slane %v329_v18, 2  ;;  %v308_v22 = vrot.slane %v307_v19, 1 }
 0x313   :  { %v331_v23 = vadd.f32 %v330_v21, %v329_v18  ;;  %v309_v24 = vadd.f32 %v308_v22, %v307_v19 }
 0x315   :  { %441 = vpush %v309_v24  ;;  %v332_v26 = vrot.slane %v331_v23, 1 }
 0x316   :  { %443 = vpush %v319_v25 }
 0x317   :  { %v333_v27 = vadd.f32 %v332_v26, %v331_v23 }
 0x319   :  { %445 = vpush %v333_v27 }
 0x346   :  { %s442_s6 = spop %441 }
 0x347   :  { %v338_v30 = vstv %s442_s6  ;;  %s444_s17 = spop %443 }
 0x348   :  { %v339_v31 = vsel %vm337_vm6, %v338_v30, 0.0  ;;  %v341_v32 = vstv %s444_s17 }
 0x349   :  { %v342_v33 = vsel %vm340_vm7, %v341_v32, 0.0 }
 0x34a   :  { %s446_s18 = spop %445  ;;  %v343_v34 = vadd.f32 %v342_v33, %v339_v31 }
 0x34b   :  { %v345_v35 = vstv %s446_s18 }
 0x34c   :  { %v346_v36 = vsel %vm344_vm8, %v345_v35, 0.0 }
 0x34d   :  { %v347_v37 = vadd.f32 %v346_v36, %v343_v34 }
 0x34f   :  { %348 = vst [vmem:[%s608_s7] sm:$0x1] %v347_v37 }

</bundles_post_ra>
